<compile_context>
chip_gen: v7x
topology: tpu7x:2x2x1
jax: 0.10.0
libtpu: 0.0.40
codegen_flags: <defaults>
</compile_context>

<pallas_src>
import functools
import math

import jax
import jax.numpy as jnp
from jax.experimental import pallas as pl
from jax.experimental.pallas import tpu as pltpu

LN_EPS = 1e-12  # BERT LayerNorm eps


def _vmem_limit_bytes():
    """Generation-aware VMEM request: ~3/4 of physical capacity, capped at 96 MiB."""
    cap = 128 * 1024 * 1024
    try:
        cap = int(pltpu.get_tpu_info().vmem_capacity_bytes)
    except Exception:
        pass
    return int(min(cap * 3 // 4, 96 * 1024 * 1024))


def _pick_q_tile(seq_len):
    if seq_len <= 256:
        return seq_len
    for t in (256, 128, 64, 32, 16, 8):
        if seq_len % t == 0:
            return t
    return seq_len


def _layer_norm(x, gamma, beta):
    # x: (rows, H) f32; gamma/beta: (1, H) f32
    mu = jnp.mean(x, axis=-1, keepdims=True)
    var = jnp.mean(jnp.square(x - mu), axis=-1, keepdims=True)
    return (x - mu) * jax.lax.rsqrt(var + LN_EPS) * gamma + beta


def _resident(shape):
    """Constant-index full block: fetched once, VMEM-resident across the whole grid."""
    nd = len(shape)
    return pl.BlockSpec(shape, lambda *_: (0,) * nd)


# ---------------- Kernel 1: embeddings sum + LayerNorm ----------------
def _embed_ln_kernel(we_ref, pe_ref, te_ref, g_ref, b_ref, out_ref):
    # we: (S, H) gathered word embeddings for one batch element
    # pe: (S, H) position embeddings, te: (1, H) token-type-0 embedding
    x = we_ref[...].astype(jnp.float32) + pe_ref[...] + te_ref[...]
    out_ref[...] = _layer_norm(x, g_ref[...], b_ref[...]).astype(out_ref.dtype)


# ---------------- Kernel 2: one full BertLayer, one (batch, q-tile) block ----------------
def _bert_layer_kernel(xq_ref, xkv_ref,
                       wq_ref, bq_ref, wkv_ref, bkv_ref,
                       wo_ref, bo_ref, g1_ref, be1_ref,
                       wi_ref, bi_ref, w2_ref, b2_ref, g2_ref, be2_ref,
                       out_ref,
                       kv_sc, ctx_sc,
                       *, num_heads, head_dim):
    f32, bf16 = jnp.float32, jnp.bfloat16
    nh, d = num_heads, head_dim
    H = nh * d

    # K/V for the full sequence: one fused lane-dense (S,H)@(H,2H) matmul, computed once
    # per batch element (first q tile) into VMEM scratch and reused by all query tiles.
    @pl.when(pl.program_id(1) == 0)
    def _():
        kv = jnp.dot(xkv_ref[...].astype(bf16), wkv_ref[...],
                     preferred_element_type=f32) + bkv_ref[...]
        kv_sc[...] = kv.astype(bf16)

    x = xq_ref[...].astype(f32)                          # (tq, H) residual stream, f32
    xb = x.astype(bf16)

    # Fused Q projection; 1/sqrt(d) is pre-folded into wq/bq on the host.
    q = jnp.dot(xb, wq_ref[...], preferred_element_type=f32) + bq_ref[...]
    qb = q.astype(bf16)                                  # (tq, H)

    # Per-head attention. Per-head context is staged into a (tq, H) scratch so the output
    # projection below is one lane-dense matmul and the MXU performs the head reduction.
    for h in range(nh):
        lo, hi = h * d, (h + 1) * d
        kh = kv_sc[:, lo:hi]                             # (S, d) bf16
        vh = kv_sc[:, H + lo:H + hi]                     # (S, d) bf16
        s = jnp.dot(qb[:, lo:hi], kh.T, preferred_element_type=f32)     # (tq, S) f32
        m = jnp.max(s, axis=-1, keepdims=True)
        p = jnp.exp(s - m)
        p = p * pl.reciprocal(jnp.sum(p, axis=-1, keepdims=True), approx=True)
        ctx_sc[:, lo:hi] = jnp.dot(p.astype(bf16), vh, preferred_element_type=f32)

    attn = jnp.dot(ctx_sc[...].astype(bf16), wo_ref[...],
                   preferred_element_type=f32) + bo_ref[...]             # (tq, H)
    x1 = _layer_norm(attn + x, g1_ref[...], be1_ref[...])                # (tq, H) f32
    x1b = x1.astype(bf16)

    # FFN: the (tq, inter) intermediate is bounded by the q tile, so no chunk loop needed.
    # TODO(synk): HF BERT uses exact erf GELU; tanh approximation used for robust Mosaic lowering.
    h_mid = jnp.dot(x1b, wi_ref[...], preferred_element_type=f32) + bi_ref[...]
    h_mid = jax.nn.gelu(h_mid, approximate=True)
    y = jnp.dot(h_mid.astype(bf16), w2_ref[...], preferred_element_type=f32) + b2_ref[...]

    out_ref[...] = _layer_norm(y + x1, g2_ref[...], be2_ref[...]).astype(out_ref.dtype)


# ---------------- Wrappers ----------------
def embeddings_forward(we, pe, te, gamma, beta):
    B, S, H = we.shape
    return pl.pallas_call(
        _embed_ln_kernel,
        out_shape=jax.ShapeDtypeStruct((B, S, H), jnp.bfloat16),   # bf16 residual stream
        grid=(B,),
        in_specs=[
            pl.BlockSpec((None, S, H), lambda b: (b, 0, 0)),        # streamed per batch elem
            _resident((S, H)),                                      # position embeddings
            _resident((1, H)),                                      # token-type-0 embedding
            _resident((1, H)),                                      # LN gamma
            _resident((1, H)),                                      # LN beta
        ],
        out_specs=pl.BlockSpec((None, S, H), lambda b: (b, 0, 0)),
        compiler_params=pltpu.CompilerParams(
            dimension_semantics=("parallel",),
            vmem_limit_bytes=_vmem_limit_bytes()),
    )(we, pe, te, gamma, beta)


def prepare_layer_params(p, num_heads):
    """Cast weights to bf16, concatenate K/V weights, fold 1/sqrt(d) into Wq/bq."""
    H = p["wq"].shape[0]
    inter = p["wi"].shape[1]
    d = H // num_heads
    scale = 1.0 / math.sqrt(d)
    bf16, f32 = jnp.bfloat16, jnp.float32
    return dict(
        wq=(p["wq"] * scale).astype(bf16),                               # (H, H)
        bq=(p["bq"] * scale).reshape(1, H).astype(f32),
        wkv=jnp.concatenate([p["wk"], p["wv"]], axis=1).astype(bf16),    # (H, 2H)
        bkv=jnp.concatenate([p["bk"], p["bv"]]).reshape(1, 2 * H).astype(f32),
        wo=p["wo"].astype(bf16),                                         # (H, H)
        bo=p["bo"].reshape(1, H).astype(f32),
        g1=p["g1"].reshape(1, H).astype(f32), be1=p["be1"].reshape(1, H).astype(f32),
        wi=p["wi"].astype(bf16), bi=p["bi"].reshape(1, inter).astype(f32),
        w2=p["w2"].astype(bf16), b2=p["bo2"].reshape(1, H).astype(f32),
        g2=p["g2"].reshape(1, H).astype(f32), be2=p["be2"].reshape(1, H).astype(f32),
    )


def bert_layer_forward(x, p, num_heads):
    B, S, H = x.shape
    d = H // num_heads
    inter = p["wi"].shape[1]
    tq = _pick_q_tile(S)
    nq = S // tq

    kern = functools.partial(_bert_layer_kernel, num_heads=num_heads, head_dim=d)

    args = (x, x,
            p["wq"], p["bq"], p["wkv"], p["bkv"], p["wo"], p["bo"],
            p["g1"], p["be1"], p["wi"], p["bi"], p["w2"], p["b2"], p["g2"], p["be2"])

    in_specs = ([pl.BlockSpec((None, tq, H), lambda b, qi: (b, qi, 0)),   # q-tile view of x
                 pl.BlockSpec((None, S, H), lambda b, qi: (b, 0, 0))]     # full-seq view (K/V)
                + [_resident(a.shape) for a in args[2:]])

    flops = int(2 * B * S * H * 3 * H            # fused Q + KV projections
                + 4 * B * S * S * H              # scores + context
                + 2 * B * S * H * H              # output projection
                + 4 * B * S * H * inter)         # FFN
    transcendentals = int(B * num_heads * S * S + B * S * inter)
    bytes_accessed = int(2 * 3 * B * S * H                       # bf16 x (two views) + out
                         + 2 * (4 * H * H + 2 * H * inter)       # bf16 weights
                         + 4 * (10 * H + inter))                 # f32 biases / LN params

    return pl.pallas_call(
        kern,
        out_shape=jax.ShapeDtypeStruct((B, S, H), jnp.bfloat16),
        grid=(B, nq),
        in_specs=in_specs,
        out_specs=pl.BlockSpec((None, tq, H), lambda b, qi: (b, qi, 0)),
        scratch_shapes=[pltpu.VMEM((S, 2 * H), jnp.bfloat16),    # K/V for the full sequence
                        pltpu.VMEM((tq, H), jnp.float32)],       # merged per-head context
        compiler_params=pltpu.CompilerParams(
            dimension_semantics=("parallel", "arbitrary"),
            vmem_limit_bytes=_vmem_limit_bytes()),
        cost_estimate=pl.CostEstimate(flops=flops,
                                      transcendentals=transcendentals,
                                      bytes_accessed=bytes_accessed),
    )(*args)


def bert_cutted_forward(input_ids, emb_params, layer_params, num_heads):
    word_emb, pos_emb, tok_emb, g, b = emb_params
    B, S = input_ids.shape
    H = word_emb.shape[1]
    # TODO(synk): data-dependent embedding row gather stays in XLA (jnp.take); fusing the
    # embeddings sum+LayerNorm into the first layer kernel would save one bf16 round trip.
    we = jnp.take(word_emb, input_ids, axis=0)        # (B, S, H)
    pe = pos_emb[:S]                                  # position_ids = arange(S)
    te = tok_emb[0].reshape(1, H)                     # token_type_ids default to 0
    y = embeddings_forward(we, pe, te, g.reshape(1, H), b.reshape(1, H))
    for raw in layer_params:                          # y = layer(y)[-1] per encoder layer
        y = bert_layer_forward(y, prepare_layer_params(raw, num_heads), num_heads)
    return y


if __name__ == "__main__":
    # Small, BERT-consistent shapes.
    B, S = 2, 8
    H, NH, INTER = 32, 4, 128
    VOCAB, MAX_POS, TYPE_VOCAB = 50, 16, 2
    NUM_LAYERS = 2   # bottleneck == 'encoder.layer.1' -> [embeddings, layer.0, layer.1]

    keys = iter(jax.random.split(jax.random.PRNGKey(0), 64))

    def w(shape, scale=0.02):
        return jax.random.normal(next(keys), shape, jnp.float32) * scale

    emb_params = (
        w((VOCAB, H)),                       # word embeddings
        w((MAX_POS, H)),                     # position embeddings
        w((TYPE_VOCAB, H)),                  # token type embeddings
        jnp.ones((H,), jnp.float32),         # LayerNorm gamma
        jnp.zeros((H,), jnp.float32),        # LayerNorm beta
    )

    layer_params = []
    for _ in range(NUM_LAYERS):
        layer_params.append(dict(
            wq=w((H, H)), bq=jnp.zeros((H,), jnp.float32),
            wk=w((H, H)), bk=jnp.zeros((H,), jnp.float32),
            wv=w((H, H)), bv=jnp.zeros((H,), jnp.float32),
            wo=w((H, H)), bo=jnp.zeros((H,), jnp.float32),
            g1=jnp.ones((H,), jnp.float32), be1=jnp.zeros((H,), jnp.float32),
            wi=w((H, INTER)), bi=jnp.zeros((INTER,), jnp.float32),
            w2=w((INTER, H)), bo2=jnp.zeros((H,), jnp.float32),
            g2=jnp.ones((H,), jnp.float32), be2=jnp.zeros((H,), jnp.float32),
        ))

    input_ids = jax.random.randint(jax.random.PRNGKey(1), (B, S), 0, VOCAB, dtype=jnp.int32)

    y = bert_cutted_forward(input_ids, emb_params, layer_params, NH)
    y = jax.block_until_ready(y)
    assert y.shape == (B, S, H)
    assert bool(jnp.all(jnp.isfinite(y.astype(jnp.float32))))
    print("KERNEL_OK")
</pallas_src>

<mosaic_0001>
module attributes {stable_mosaic.version = 11 : i64} {
  func.func @_embed_ln_kernel(%arg0: i32, %arg1: memref<1x8x32xf32, #tpu.memory_space<vmem>>, %arg2: memref<8x32xf32, #tpu.memory_space<vmem>>, %arg3: memref<1x32xf32, #tpu.memory_space<vmem>>, %arg4: memref<1x32xf32, #tpu.memory_space<vmem>>, %arg5: memref<1x32xf32, #tpu.memory_space<vmem>>, %arg6: memref<1x8x32xbf16, #tpu.memory_space<vmem>>) attributes {dimension_semantics = [#tpu.dimension_semantics<parallel>], iteration_bounds = array<i64: 2>, scalar_prefetch = 0 : i64, scratch_operands = 0 : i64, tpu.core_type = #tpu.core_type<tc>, window_params = [{transform_indices = @transform_0, window_bounds = array<i64: 1, 8, 32>}, {pipeline_mode = #tpu.pipeline_mode<synchronous>, transform_indices = @transform_1, window_bounds = array<i64: 8, 32>}, {pipeline_mode = #tpu.pipeline_mode<synchronous>, transform_indices = @transform_2, window_bounds = array<i64: 1, 32>}, {pipeline_mode = #tpu.pipeline_mode<synchronous>, transform_indices = @transform_3, window_bounds = array<i64: 1, 32>}, {pipeline_mode = #tpu.pipeline_mode<synchronous>, transform_indices = @transform_4, window_bounds = array<i64: 1, 32>}, {transform_indices = @transform_5, window_bounds = array<i64: 1, 8, 32>}]} {
    %c0 = arith.constant 0 : index
    %c0_0 = arith.constant 0 : index
    %c0_1 = arith.constant 0 : index
    %0 = vector.load %arg1[%c0, %c0_0, %c0_1] : memref<1x8x32xf32, #tpu.memory_space<vmem>>, vector<1x8x32xf32>
    %1 = vector.shape_cast %0 : vector<1x8x32xf32> to vector<8x32xf32>
    %c0_2 = arith.constant 0 : index
    %c0_3 = arith.constant 0 : index
    %2 = vector.load %arg2[%c0_2, %c0_3] : memref<8x32xf32, #tpu.memory_space<vmem>>, vector<8x32xf32>
    %3 = arith.addf %1, %2 : vector<8x32xf32>
    %c0_4 = arith.constant 0 : index
    %c0_5 = arith.constant 0 : index
    %4 = vector.load %arg3[%c0_4, %c0_5] : memref<1x32xf32, #tpu.memory_space<vmem>>, vector<1x32xf32>
    %5 = vector.broadcast %4 : vector<1x32xf32> to vector<8x32xf32>
    %6 = arith.addf %3, %5 : vector<8x32xf32>
    %c0_6 = arith.constant 0 : index
    %c0_7 = arith.constant 0 : index
    %7 = vector.load %arg4[%c0_6, %c0_7] : memref<1x32xf32, #tpu.memory_space<vmem>>, vector<1x32xf32>
    %c0_8 = arith.constant 0 : index
    %c0_9 = arith.constant 0 : index
    %8 = vector.load %arg5[%c0_8, %c0_9] : memref<1x32xf32, #tpu.memory_space<vmem>>, vector<1x32xf32>
    %cst = arith.constant dense<0.000000e+00> : vector<8xf32>
    %9 = vector.multi_reduction <add>, %6, %cst [1] : vector<8x32xf32> to vector<8xf32>
    %10 = vector.shape_cast %9 : vector<8xf32> to vector<8x1xf32>
    %cst_10 = arith.constant 3.200000e+01 : f32
    %11 = vector.broadcast %cst_10 : f32 to vector<8x1xf32>
    %12 = arith.divf %10, %11 : vector<8x1xf32>
    %13 = vector.broadcast %12 : vector<8x1xf32> to vector<8x32xf32>
    %14 = arith.subf %6, %13 : vector<8x32xf32>
    %15 = arith.mulf %14, %14 : vector<8x32xf32>
    %cst_11 = arith.constant dense<0.000000e+00> : vector<8xf32>
    %16 = vector.multi_reduction <add>, %15, %cst_11 [1] : vector<8x32xf32> to vector<8xf32>
    %17 = vector.shape_cast %16 : vector<8xf32> to vector<8x1xf32>
    %cst_12 = arith.constant 3.200000e+01 : f32
    %18 = vector.broadcast %cst_12 : f32 to vector<8x1xf32>
    %19 = arith.divf %17, %18 : vector<8x1xf32>
    %20 = vector.broadcast %12 : vector<8x1xf32> to vector<8x32xf32>
    %21 = arith.subf %6, %20 : vector<8x32xf32>
    %cst_13 = arith.constant 9.99999996E-13 : f32
    %22 = vector.broadcast %cst_13 : f32 to vector<8x1xf32>
    %23 = arith.addf %19, %22 : vector<8x1xf32>
    %24 = math.rsqrt %23 : vector<8x1xf32>
    %25 = vector.broadcast %24 : vector<8x1xf32> to vector<8x32xf32>
    %26 = arith.mulf %21, %25 : vector<8x32xf32>
    %27 = vector.broadcast %7 : vector<1x32xf32> to vector<8x32xf32>
    %28 = arith.mulf %26, %27 : vector<8x32xf32>
    %29 = vector.broadcast %8 : vector<1x32xf32> to vector<8x32xf32>
    %30 = arith.addf %28, %29 : vector<8x32xf32>
    %31 = arith.truncf %30 : vector<8x32xf32> to vector<8x32xbf16>
    %c0_14 = arith.constant 0 : index
    %c0_15 = arith.constant 0 : index
    %c0_16 = arith.constant 0 : index
    %32 = vector.load %arg6[%c0_14, %c0_15, %c0_16] : memref<1x8x32xbf16, #tpu.memory_space<vmem>>, vector<1x8x32xbf16>
    %33 = vector.shape_cast %32 : vector<1x8x32xbf16> to vector<8x32xbf16>
    %34 = vector.shape_cast %31 : vector<8x32xbf16> to vector<1x8x32xbf16>
    tpu.vector_store %arg6[%c0_14, %c0_15, %c0_16], %34 {strides = array<i32>} : memref<1x8x32xbf16, #tpu.memory_space<vmem>>, vector<1x8x32xbf16>,
    return
  }
  func.func @transform_0(%arg0: i32) -> (i32, i32, i32) {
    %c0_i32 = arith.constant 0 : i32
    %c0_i32_0 = arith.constant 0 : i32
    %c0_i32_1 = arith.constant 0 : i32
    return %arg0, %c0_i32, %c0_i32_0 : i32, i32, i32
  }
  func.func @transform_1(%arg0: i32) -> (i32, i32) {
    %c0_i32 = arith.constant 0 : i32
    %c0_i32_0 = arith.constant 0 : i32
    %c0_i32_1 = arith.constant 0 : i32
    return %c0_i32, %c0_i32_0 : i32, i32
  }
  func.func @transform_2(%arg0: i32) -> (i32, i32) {
    %c0_i32 = arith.constant 0 : i32
    %c0_i32_0 = arith.constant 0 : i32
    %c0_i32_1 = arith.constant 0 : i32
    return %c0_i32, %c0_i32_0 : i32, i32
  }
  func.func @transform_3(%arg0: i32) -> (i32, i32) {
    %c0_i32 = arith.constant 0 : i32
    %c0_i32_0 = arith.constant 0 : i32
    %c0_i32_1 = arith.constant 0 : i32
    return %c0_i32, %c0_i32_0 : i32, i32
  }
  func.func @transform_4(%arg0: i32) -> (i32, i32) {
    %c0_i32 = arith.constant 0 : i32
    %c0_i32_0 = arith.constant 0 : i32
    %c0_i32_1 = arith.constant 0 : i32
    return %c0_i32, %c0_i32_0 : i32, i32
  }
  func.func @transform_5(%arg0: i32) -> (i32, i32, i32) {
    %c0_i32 = arith.constant 0 : i32
    %c0_i32_0 = arith.constant 0 : i32
    %c0_i32_1 = arith.constant 0 : i32
    return %arg0, %c0_i32, %c0_i32_0 : i32, i32, i32
  }
}

</mosaic_0001>

<bundles_post_ra>
// kernel: tpu_custom_call.1
= control target key start
LH: loop header
LB: loop body
LE: loop exit
PB: predicated region body
PF: predicated region fallthrough
CT: control target
= control target key end

     0   :  { %10 = vsyncpa [#allocation3], 0  ;;  %s1109_s0 = inlined_call_operand.hbm [shape: f32[2,8,32], index: 0, kind: input, shape index: {}]   ;;  %s1110_s1 = inlined_call_operand.hbm [shape: f32[8,32], index: 1, kind: input, shape index: {}]   ;;  %s1111_s2 = inlined_call_operand.hbm [shape: f32[1,32], index: 2, kind: input, shape index: {}]   ;;  %s1112_s3 = inlined_call_operand.hbm [shape: f32[1,32], index: 3, kind: input, shape index: {}]   ;;  %s1113_s4 = inlined_call_operand.hbm [shape: f32[1,32], index: 4, kind: input, shape index: {}]   ;;  %s1114_s5 = inlined_call_operand.hbm [shape: bf16[2,8,32], index: 5, kind: output, shape index: {}]  }
   0x1   :  { %12 = vsyncpa [#allocation3 + $0x1], 0 }
   0x2   :  { %13 = vsyncpa [#allocation6], 0 }
   0x3   :  { %14 = vsyncpa [#allocation9], 0 }
   0x4   :  { %15 = vsyncpa [#allocation4], 0 }
   0x5   :  { %17 = vsyncpa [#allocation4 + $0x1], 0  ;;  %s823_s18 = smov 0   ;;  %s825_s19 = smov 0  }
   0x6   :  { %s827_s20 = smov 0   ;;  %s829_s21 = smov 0  }
   0x7 LB: > { %s787_s22 = smov [#allocation5]   ;;  %s844_s24 = sadd.s32 4294967295, %s785_s21   ;;  %s785_s21 = sphi %s829_s21, %s1138_s21   ;;  %s781_s20 = sphi %s827_s20, %s1137_s20   ;;  %s777_s19 = sphi %s825_s19, %s1136_s19   ;;  %s773_s18 = sphi %s823_s18, %s1135_s18  }
   0x8   : > { %s177_s23 = sshll.u32 %s787_s22, 4  ;;  %p458_p0 = scmp.ge.s32.totalorder %s785_s21, 1  ;;  %s849_s23 = int_to_ptr.vmem [resolvable:$true] %s177_s23 }
   0x9   : > { %p1115_p1 = scmp.eq.s32.totalorder %s844_s24, 0  ;;  %p164_p2 = scmp.lt.s32.totalorder %s785_s21, 3 }
   0xa   : > { %s788_s26 = smov [#allocation8]   ;;  %s789_s28 = smov [#allocation7]  }
   0xb   : > { %p851_p3 = pnand %p458_p0, %p164_p2  ;;  %s199_s27 = sshll.u32 %s788_s26, 4  ;;  %s858_s27 = int_to_ptr.vmem [resolvable:$true] %s199_s27 }
   0xc   : > { %s188_s29 = sshll.u32 %s789_s28, 4  ;;  %s790_s6 = smov [#allocation10]   ;;  %s866_s29 = int_to_ptr.vmem [resolvable:$true] %s188_s29 }
   0xd   : > { %s1118_s25 = scalar_select %p851_p3, 1, 0 }
   0xe   : > { %p500_p5 = pneg %p851_p3  ;;  %s868_s7 = sshll.u32 %s790_s6, 4  ;;  %s211_s7 = int_to_ptr.vmem [resolvable:$true] %s868_s7 }
   0xf   : > { %s569_s10 = scalar_lea.hbm %s1110_s1, 128 }
  0x10   : > { %p862_p6 = pnand %p500_p5, %p1115_p1  ;;  %p570_p7 = scmp.ne.s32.totalorder %s1110_s1, %s569_s10 }
  0x11   : > { %p576_p11 = scmp.lt.u32.totalorder %s569_s10, %s1110_s1 }
  0x12   : > { %p878_p8 = pneg %p862_p6 }
  0x14   : > { %p572_p9 = pnand %p878_p8, %p570_p7 }
  0x16   : > { %p573_p10 = pneg %p572_p9 }
  0x18   : > { %p578_p12 = pnand %p576_p11, %p573_p10 }
  0x1a   : > { %581 = shalt.err (!%p578_p12)
}
  0x1b   : > { %s582_s16 = scalar_lea.vmem %s849_s23, 128  ;;  %p590_p5 = scmp.lt.s32.totalorder %s849_s23, %s849_s23 }
  0x1c   : > { %p583_p13 = scmp.ne.s32.totalorder %s849_s23, %s582_s16  ;;  %p591_p4 = scmp.lt.s32.totalorder %s582_s16, %s582_s16 }
  0x1e   : > { %p585_p0 = pnand %p583_p13, %p878_p8  ;;  %p592_p7 = por %p591_p4, %p590_p5 }
  0x20   : > { %p586_p2 = pneg %p585_p0 }
  0x22   : > { %p593_p9 = pnand %p592_p7, %p586_p2 }
  0x24   : > { %596 = shalt.err (!%p593_p9)
}
  0x25   : > { %503 = dma.hbm_to_vmem [thread:$0]  (!%p862_p6), %s1110_s1, 128, %s849_s23, [#allocation6]  }
  0x26   : > { %s597_s6 = scalar_lea.hbm %s1112_s3, 16 }
  0x27   : > { %p598_p10 = scmp.ne.s32.totalorder %s1112_s3, %s597_s6  ;;  %p604_p12 = scmp.lt.u32.totalorder %s597_s6, %s1112_s3 }
  0x29   : > { %p600_p4 = pnand %p598_p10, %p878_p8 }
  0x2b   : > { %p601_p11 = pneg %p600_p4 }
  0x2d   : > { %p606_p13 = pnand %p604_p12, %p601_p11 }
  0x2f   : > { %609 = shalt.err (!%p606_p13)
}
  0x30   : > { %s610_s23 = scalar_lea.vmem %s858_s27, 16  ;;  %s617_s12 = scalar_lea.vmem %s858_s27, 32 }
  0x31   : > { %p611_p0 = scmp.ne.s32.totalorder %s858_s27, %s610_s23  ;;  %p618_p7 = scmp.lt.s32.totalorder %s858_s27, %s858_s27 }
  0x32   : > { %p619_p9 = scmp.lt.s32.totalorder %s617_s12, %s610_s23 }
  0x33   : > { %p613_p2 = pnand %p611_p0, %p878_p8 }
  0x34   : > { %p620_p10 = por %p619_p9, %p618_p7 }
  0x35   : > { %p614_p5 = pneg %p613_p2 }
  0x37   : > { %p621_p4 = pnand %p620_p10, %p614_p5 }
  0x39   : > { %624 = shalt.err (!%p621_p4)
}
  0x3a   : > { %509 = dma.hbm_to_vmem [thread:$0]  (!%p862_p6), %s1112_s3, 16, %s858_s27, [#allocation9]  }
  0x3b   : > { %s625_s22 = scalar_lea.hbm %s1111_s2, 16 }
  0x3c   : > { %p626_p11 = scmp.ne.s32.totalorder %s1111_s2, %s625_s22  ;;  %p632_p0 = scmp.lt.u32.totalorder %s625_s22, %s1111_s2 }
  0x3e   : > { %p628_p12 = pnand %p626_p11, %p878_p8 }
  0x40   : > { %p629_p13 = pneg %p628_p12 }
  0x42   : > { %p634_p2 = pnand %p632_p0, %p629_p13 }
  0x44   : > { %637 = shalt.err (!%p634_p2)
}
  0x45   : > { %s638_s27 = scalar_lea.vmem %s866_s29, 16  ;;  %s645_s9 = scalar_lea.vmem %s866_s29, 32 }
  0x46   : > { %p639_p5 = scmp.ne.s32.totalorder %s866_s29, %s638_s27  ;;  %p646_p10 = scmp.lt.s32.totalorder %s866_s29, %s866_s29 }
  0x47   : > { %p647_p4 = scmp.lt.s32.totalorder %s645_s9, %s638_s27 }
  0x48   : > { %p641_p7 = pnand %p639_p5, %p878_p8 }
  0x49   : > { %p648_p11 = por %p647_p4, %p646_p10 }
  0x4a   : > { %p642_p9 = pneg %p641_p7 }
  0x4c   : > { %p649_p12 = pnand %p648_p11, %p642_p9 }
  0x4e   : > { %652 = shalt.err (!%p649_p12)
}
  0x4f   : > { %506 = dma.hbm_to_vmem [thread:$0]  (!%p862_p6), %s1111_s2, 16, %s866_s29, [#allocation6]  }
  0x50   : > { %s653_s14 = scalar_lea.hbm %s1113_s4, 16 }
  0x51   : > { %p654_p13 = scmp.ne.s32.totalorder %s1113_s4, %s653_s14  ;;  %p660_p5 = scmp.lt.u32.totalorder %s653_s14, %s1113_s4 }
  0x53   : > { %p656_p0 = pnand %p654_p13, %p878_p8 }
  0x55   : > { %p657_p2 = pneg %p656_p0 }
  0x57   : > { %p662_p7 = pnand %p660_p5, %p657_p2 }
  0x59   : > { %665 = shalt.err (!%p662_p7)
}
  0x5a   : > { %s666_s26 = scalar_lea.vmem %s211_s7, 16  ;;  %s673_s29 = scalar_lea.vmem %s211_s7, 32 }
  0x5b   : > { %p667_p9 = scmp.ne.s32.totalorder %s211_s7, %s666_s26  ;;  %p674_p11 = scmp.lt.s32.totalorder %s211_s7, %s211_s7 }
  0x5c   : > { %p675_p12 = scmp.lt.s32.totalorder %s673_s29, %s666_s26 }
  0x5d   : > { %p669_p10 = pnand %p667_p9, %p878_p8 }
  0x5e   : > { %p676_p1 = por %p675_p12, %p674_p11 }
  0x5f   : > { %p670_p4 = pneg %p669_p10 }
  0x61   : > { %p677_p3 = pnand %p676_p1, %p670_p4 }
  0x63   : > { %680 = shalt.err (!%p677_p3)
}
  0x64   : > { %512 = dma.hbm_to_vmem [thread:$0]  (!%p862_p6), %s1113_s4, 16, %s211_s7, [#allocation9]  }
  0x65   : > { %s457_s13 = sadd.s32 4294967294, %s785_s21   ;;  %s968_s30 = sadd.s32 1, %s785_s21  }
  0x66   : > { %s27_s8 = ssub.s32 %s785_s21, %s968_s30  ;;  %s30_s27 = sadd.s32 1, %s781_s20 }
  0x67   : > { %p28_p1 = scmp.eq.s32.totalorder %s27_s8, 0  ;;  %p37_p3 = scmp.ne.s32.totalorder %s781_s20, %s777_s19 }
  0x68   : > { %p38_p8 = scmp.eq.s32.totalorder %s785_s21, 0  ;;  %p43_p13 = scmp.ne.s32.totalorder %s777_s19, %s773_s18 }
  0x69   : > { %s979_s9 = scalar_select %p28_p1, %s781_s20, %s30_s27  }
  0x6a   : > { %p981_p0 = por %p38_p8, %p37_p3  ;;  %p1122_p2 = scmp.eq.s32.totalorder %s844_s24, 0 }
  0x6b   : > { %p151_p5 = scmp.eq.s32.totalorder %s844_s24, 1  ;;  %p157_p7 = scmp.eq.s32.totalorder %s457_s13, 1 }
  0x6c   : > { %p987_p6 = por %p1122_p2, %p43_p13  ;;  %p525_p9 = scmp.lt.s32.totalorder %s785_s21, 2 }
  0x6d   : > { %s221_s11 = sand.u32 1, %s781_s20   ;;  %p994_p10 = por %p151_p5, %p37_p3 }
  0x6e   : > { %p998_p4 = por %p157_p7, %p43_p13  ;;  %s464_s14 = sshll.u32 %s221_s11, 3 }
  0x6f   : > { %s1124_s23 = scalar_select %p994_p10, 1, 0 }
  0x70   : > { %s1125_s12 = scalar_select %p998_p4, 1, 0 }
  0x71   : > { %s465_s15 = sshll.u32 %s785_s21, 7  ;;  %s225_s26 = scalar_lea.vmem [#allocation2], %s464_s14 }
  0x72   : > { %s1006_s22 = scalar_lea.hbm %s1109_s0, %s465_s15  ;;  %s232_s29 = sshll.u32 %s225_s26, 4  ;;  %s1008_s29 = int_to_ptr.vmem [resolvable:$true] %s232_s29 }
  0x73   : > { %p1012_p11 = pnand %p525_p9, %p981_p0  ;;  %s222_s6 = scalar_lea.sflag [#allocation3], %s221_s11 }
  0x74   : > { %s681_s13 = scalar_lea.hbm %s1006_s22, 128  ;;  %s686_s14 = scalar_lea.hbm %s1109_s0, 256 }
  0x75   : > { %p682_p12 = scmp.ne.s32.totalorder %s1006_s22, %s681_s13  ;;  %p683_p1 = pneg %p1012_p11 }
  0x76   : > { %p687_p13 = scmp.lt.u32.totalorder %s1006_s22, %s1109_s0  ;;  %p688_p0 = scmp.lt.u32.totalorder %s686_s14, %s681_s13 }
  0x77   : > { %p684_p3 = pnand %p683_p1, %p682_p12  ;;  %p690_p5 = scmp.lt.u32.totalorder %s681_s13, %s1006_s22 }
  0x78   : > { %p689_p2 = por %p688_p0, %p687_p13 }
  0x79   : > { %p685_p8 = pneg %p684_p3 }
  0x7a   : > { %p691_p7 = por %p690_p5, %p689_p2 }
  0x7c   : > { %p692_p9 = pnand %p691_p7, %p685_p8 }
  0x7e   : > { %695 = shalt.err (!%p692_p9)
}
  0x7f   : > { %s696_s11 = scalar_lea.vmem %s1008_s29, 128  ;;  %s791_s16 = smov [#allocation2]  }
  0x80   : > { %p697_p12 = scmp.ne.s32.totalorder %s1008_s29, %s696_s11  ;;  %s701_s17 = sshll.u32 %s791_s16, 4  ;;  %s702_s17 = int_to_ptr.vmem [resolvable:$false] %s701_s17 }
  0x81   : > { %s703_s26 = scalar_lea.vmem %s702_s17, 256  ;;  %p704_p10 = scmp.lt.s32.totalorder %s1008_s29, %s702_s17 }
  0x82   : > { %p699_p3 = pnand %p697_p12, %p683_p1  ;;  %p705_p13 = scmp.lt.s32.totalorder %s703_s26, %s696_s11 }
  0x84   : > { %p700_p4 = pneg %p699_p3  ;;  %p706_p0 = por %p705_p13, %p704_p10 }
  0x86   : > { %p707_p2 = pnand %p706_p0, %p700_p4 }
  0x88   : > { %710 = shalt.err (!%p707_p2)
}
  0x89   : > { %516 = dma.hbm_to_vmem [thread:$0]  (!%p1012_p11), %s1006_s22, 128, %s1008_s29, %s222_s6  }
  0x8a   : > { %p1127_p8 = scmp.ne.s32.totalorder %s1118_s25, 0 }
  0x8b   : > { %s1044_s13 = sand.u32 (!%p1127_p8), 1, %s777_s19  }
  0x8c   : > { %241 = sbr.rel (%p1127_p8) target bundleno = 489 (0x1e9), region = 40  ;;  %s467_s8 = sshll.u32 (!%p1127_p8), %s1044_s13, 3 }
  0x8d   : > { %s244_s27 = scalar_lea.sflag (!%p1127_p8), [#allocation3], %s1044_s13  ;;  %s247_s14 = scalar_lea.vmem (!%p1127_p8), [#allocation2], %s467_s8 }
  0x93   : > { %756 = dma.done.wait (%p987_p6), %s244_s27, 128  }
  0x94   : > { %758 = vsyncadd (%p987_p6), %s244_s27, 4294967168  ;;  %p1128_p10 = scmp.eq.s32.totalorder %s844_s24, 0 }
  0x96   : > { %760 = dma.done.wait (%p1128_p10), [#allocation6], 144   ;;  %p1129_p4 = pmov %p1128_p10 }
  0x98   : > { %762 = vsyncadd (%p1129_p4), [#allocation6], 4294967152  ;;  %p1130_p11 = pmov %p1129_p4 }
  0x99   : > { %p1131_p1 = pmov %p1129_p4 }
  0x9a   : > { %764 = dma.done.wait (%p1130_p11), [#allocation9], 32  }
  0x9b   : > { %766 = vsyncadd (%p1131_p1), [#allocation9], 4294967264  ;;  %v290_v0 = vld [vmem:[%s247_s14] sm:$0xff]  ;;  %v291_v1 = vld [vmem:[#allocation5] sm:$0xff]  ;;  %vm303_vm0 = vcmask 261120   ;;  %s472_s25 = sshll.u32 %s1044_s13, 2 }
  0x9c   : > { %v473_v2 = vld [vmem:[#allocation7] ss:$0 sm:$0xff]  ;;  %v292_v3 = vadd.f32 %v291_v1, %v290_v0  ;;  %v474_v15 = vld [vmem:[#allocation8] ss:$0 sm:$0xff]  ;;  %v475_v17 = vld [vmem:[#allocation10] ss:$0 sm:$0xff] }
  0x9d   : > { %s477_s7 = sshll.u32 %s844_s24, 6  ;;  %s289_s22 = scalar_lea.vmem [#allocation11], %s472_s25  ;;  %vm333_vm1 = vcmask 257024  }
  0x9e   : > { %v300_v4 = vadd.f32 %v473_v2, %v292_v3  ;;  %s349_s29 = sshll.u32 %s289_s22, 4  ;;  %s1065_s10 = scalar_lea.hbm %s1114_s5, %s477_s7  ;;  %s1067_s29 = int_to_ptr.vmem [resolvable:$true] %s349_s29 }
  0x9f   : > { %s336_s15 = scalar_lea.sflag [#allocation4], %s1044_s13  ;;  %s711_s11 = scalar_lea.vmem %s1067_s29, 64 }
  0xa0   : > { %v304_v5 = vsel %vm303_vm0, %v300_v4, 0.0  ;;  %p712_p6 = scmp.ne.s32.totalorder %s1067_s29, %s711_s11  ;;  %p1132_p5 = scmp.ne.s32.totalorder %s1124_s23, 0 }
  0xa1   : > { %305 = vadd.xlane.f32.xlu0 %v304_v5  ;;  %s792_s24 = smov [#allocation11]  }
  0xa2   : > { %p713_p7 = pnand %p712_p6, %p1132_p5  ;;  %s715_s16 = sshll.u32 %s792_s24, 4  ;;  %s716_s16 = int_to_ptr.vmem [resolvable:$false] %s715_s16 }
  0xa3   : > { %s717_s17 = scalar_lea.vmem %s716_s16, 128  ;;  %p718_p12 = scmp.lt.s32.totalorder %s1067_s29, %s716_s16 }
  0xa4   : > { %p714_p9 = pneg %p713_p7  ;;  %p719_p3 = scmp.lt.s32.totalorder %s717_s17, %s711_s11 }
  0xa6   : > { %p720_p13 = por %p719_p3, %p718_p12 }
  0xa8   : > { %p721_p0 = pnand %p720_p13, %p714_p9 }
 0x12e   : > { %v306_v6 = vpop.xlane.xlu0 %305 }
 0x12f   : > { %v308_v7 = vmul.f32 0.03125, %v306_v6 }
 0x131   : > { %v309_v8 = vsub.f32 %v300_v4, %v308_v7 }
 0x133   : > { %v310_v9 = vmul.f32 %v309_v8, %v309_v8 }
 0x135   : > { %v311_v10 = vsel %vm303_vm0, %v310_v9, 0.0 }
 0x136   : > { %312 = vadd.xlane.f32.xlu0 %v311_v10 }
 0x1c3   : > { %v313_v11 = vpop.xlane.xlu0 %312 }
 0x1c4   : > { %v314_v12 = vmul.f32 0.03125, %v313_v11 }
 0x1c6   : > { %v315_v13 = vadd.f32 1e-12, %v314_v12 }
 0x1c8   : > { %567 = vrsqrt.f32 %v315_v13 }
 0x1d2   : > { %v568_v14 = vpop.eup %567 }
 0x1d3   : > { %v317_v16 = vmul.f32 %v568_v14, %v309_v8 }
 0x1d5   : > { %v324_v18 = vmul.f32 %v474_v15, %v317_v16 }
 0x1d7   : > { %v331_v19 = vadd.f32 %v475_v17, %v324_v18 }
 0x1d9   : > { %v332_v20 = vpack.c.bf16 %v331_v19, %v331_v19 }
 0x1db   : > { %334 = vst.msk [vmem:[%s289_s22] sm:$0xf] %vm333_vm1, %v332_v20 }
 0x1dc   : > { %724 = shalt.err (!%p721_p0)
}
 0x1dd   : > { %s725_s26 = scalar_lea.hbm %s1065_s10, 64  ;;  %s729_s27 = scalar_lea.hbm %s1114_s5, 128 }
 0x1de   : > { %p726_p2 = scmp.ne.s32.totalorder %s1065_s10, %s725_s26  ;;  %p730_p4 = scmp.lt.u32.totalorder %s1065_s10, %s1114_s5 }
 0x1df   : > { %p731_p11 = scmp.lt.u32.totalorder %s729_s27, %s725_s26  ;;  %p733_p6 = scmp.lt.u32.totalorder %s725_s26, %s1065_s10 }
 0x1e0   : > { %p727_p8 = pnand %p726_p2, %p1132_p5 }
 0x1e1   : > { %p732_p1 = por %p731_p11, %p730_p4 }
 0x1e2   : > { %p728_p10 = pneg %p727_p8 }
 0x1e3   : > { %p734_p7 = por %p733_p6, %p732_p1 }
 0x1e5   : > { %p735_p9 = pnand %p734_p7, %p728_p10 }
 0x1e7   : > { %738 = shalt.err (!%p735_p9)
}
 0x1e8   : > { %498 = dma.vmem_to_hbm [thread:$0]  (%p1132_p5), %s1067_s29, 64, %s1065_s10, %s336_s15  }
 0x1e9 PF: > { %s361_s7 = sand.u32 1, %s773_s18   ;;  %p1133_p12 = scmp.ne.s32.totalorder %s1125_s12, 0 }
 0x1ea   : > { %p1134_p3 = scmp.ge.s32.totalorder %s785_s21, 2  ;;  %s362_s22 = scalar_lea.sflag [#allocation4], %s361_s7 }
 0x1ec   : > { %p518_p13 = pnand %p1134_p3, %p1133_p12 }
 0x1ee   : > { %768 = dma.done.wait (!%p518_p13), %s362_s22, 64  }
 0x1ef   : > { %770 = vsyncadd (!%p518_p13), %s362_s22, 4294967232  ;;  %p20_p0 = scmp.ge.s32.totalorder %s968_s30, 4   ;;  %s1135_s18 = smov %s777_s19 }
 0x1f0   : > { %s1136_s19 = smov %s781_s20  ;;  %s1137_s20 = smov %s979_s9 }
 0x1f1   : > { %s1138_s21 = smov %s968_s30  ;;  %22 = sbr.rel (!%p20_p0) target bundleno = 7 (0x7), region = 101 }
 0x1f8   :  { %367 = vsyncpa [#allocation3], 1 }
 0x1f9   :  { %369 = vsyncpa [#allocation3 + $0x1], 1 }
 0x1fa   :  { %370 = vsyncpa [#allocation6], 1 }
 0x1fb   :  { %371 = vsyncpa [#allocation9], 1 }
 0x1fc   :  { %372 = vsyncpa [#allocation4], 1 }
 0x1fd   :  { %374 = vsyncpa [#allocation4 + $0x1], 1 }

</bundles_post_ra>
